<compile_context>
chip_gen: v7x
topology: tpu7x:2x2x1
jax: 0.10.0
libtpu: 0.0.40
codegen_flags: <defaults>
</compile_context>

<pallas_src>
import functools

import jax
import jax.numpy as jnp
from jax.experimental import pallas as pl
from jax.experimental.pallas import tpu as pltpu


def _round_up(x, m):
    return ((x + m - 1) // m) * m


# ---------------------------------------------------------------------------
# Kernels
# ---------------------------------------------------------------------------
def _gram_resident_kernel(phi_ref, out_ref, *, tm, tn, noise_var):
    """One (tm, tn) tile of PHI @ PHI.T (+ ridge on diagonal tiles).

    PHI (M_pad, D_pad) is fully VMEM-resident (constant index_map); the two
    row slabs for this tile are sliced out locally (static-stride slices of a
    resident ref, no extra DMA).
    """
    i = pl.program_id(0)
    j = pl.program_id(1)
    row0 = pl.multiple_of(i * tm, tm)
    col0 = pl.multiple_of(j * tn, tn)
    a = phi_ref[pl.ds(row0, tm), :]            # (tm, D_pad)
    b = phi_ref[pl.ds(col0, tn), :]            # (tn, D_pad)
    # Contract the last (lane) dims directly -> no transpose/relayout of b.
    acc = jax.lax.dot_general(
        a, b, dimension_numbers=(((1,), (1,)), ((), ())),
        preferred_element_type=jnp.float32)

    @pl.when(i != j)
    def _():
        out_ref[...] = acc

    @pl.when(i == j)
    def _():
        # tm == tn, so inside a diagonal tile the global diagonal is r == c.
        rows = jax.lax.broadcasted_iota(jnp.int32, (tm, tn), 0)
        cols = jax.lax.broadcasted_iota(jnp.int32, (tm, tn), 1)
        out_ref[...] = acc + jnp.where(rows == cols,
                                       jnp.float32(noise_var),
                                       jnp.float32(0.0))


def _gram_tiled_kernel(phi_i_ref, phi_j_ref, out_ref, *, noise_var):
    """Large-M fallback: (tm, D_pad) and (tn, D_pad) row slabs streamed per step."""
    i = pl.program_id(0)
    j = pl.program_id(1)
    acc = jax.lax.dot_general(
        phi_i_ref[...], phi_j_ref[...],
        dimension_numbers=(((1,), (1,)), ((), ())),
        preferred_element_type=jnp.float32)

    @pl.when(i != j)
    def _():
        out_ref[...] = acc

    @pl.when(i == j)
    def _():
        tm, tn = out_ref.shape
        rows = jax.lax.broadcasted_iota(jnp.int32, (tm, tn), 0)
        cols = jax.lax.broadcasted_iota(jnp.int32, (tm, tn), 1)
        out_ref[...] = acc + jnp.where(rows == cols,
                                       jnp.float32(noise_var),
                                       jnp.float32(0.0))


# ---------------------------------------------------------------------------
# Wrapper
# ---------------------------------------------------------------------------
def gp_covariance(phi, noise_signal, *, tile=512,
                  resident_limit_bytes=8 * 2**20):
    """Full GP covariance: PHI @ PHI.T + eye * noise_signal**2 (exact (M, M))."""
    M, D = phi.shape
    noise_var = float(noise_signal) ** 2           # White(signal).signal ** 2
    phi = phi.astype(jnp.float32)                  # keep f32 (PSD downstream)

    # Lane-dense contraction dim; zero columns don't change the Gram matrix.
    d_pad = _round_up(D, 128)
    # Clamp the tile for small problems; keep it a multiple of (8, 128).
    tile = max(128, min(tile, _round_up(M, 128)))
    tm = tn = tile
    grid = (pl.cdiv(M, tm), pl.cdiv(M, tn))        # ragged edge: masked writes

    cost = pl.CostEstimate(flops=2 * M * M * d_pad,
                           transcendentals=0,
                           bytes_accessed=4 * M * M + 4 * M * d_pad)
    cparams = pltpu.CompilerParams(
        dimension_semantics=("parallel", "parallel"),
        # Headroom: worst case = 2x resident PHI (pipeline bufs) + 2x 512x512
        # f32 output tiles ~ 20 MiB; keep well under physical VMEM everywhere.
        vmem_limit_bytes=48 * 2**20)

    m_pad = _round_up(M, tm)                       # keep in-kernel slices in bounds
    if m_pad * d_pad * 4 <= resident_limit_bytes:
        # PHI fits comfortably in VMEM: single DMA, resident across the grid.
        phi_p = jnp.pad(phi, ((0, m_pad - M), (0, d_pad - D)))
        kernel = functools.partial(_gram_resident_kernel,
                                   tm=tm, tn=tn, noise_var=noise_var)
        return pl.pallas_call(
            kernel,
            out_shape=jax.ShapeDtypeStruct((M, M), jnp.float32),
            grid_spec=pltpu.PrefetchScalarGridSpec(
                num_scalar_prefetch=0,
                grid=grid,
                in_specs=[pl.BlockSpec((m_pad, d_pad), lambda i, j: (0, 0))],
                out_specs=pl.BlockSpec((tm, tn), lambda i, j: (i, j)),
            ),
            compiler_params=cparams,
            cost_estimate=cost,
        )(phi_p)

    # Large-M fallback: stream row slabs; ragged last blocks hold garbage rows
    # whose products only land in output rows/cols >= M, which Pallas masks.
    phi_p = jnp.pad(phi, ((0, 0), (0, d_pad - D)))
    kernel = functools.partial(_gram_tiled_kernel, noise_var=noise_var)
    return pl.pallas_call(
        kernel,
        out_shape=jax.ShapeDtypeStruct((M, M), jnp.float32),
        grid_spec=pltpu.PrefetchScalarGridSpec(
            num_scalar_prefetch=0,
            grid=grid,
            in_specs=[pl.BlockSpec((tm, d_pad), lambda i, j: (i, 0)),
                      pl.BlockSpec((tn, d_pad), lambda i, j: (j, 0))],
            out_specs=pl.BlockSpec((tm, tn), lambda i, j: (i, j)),
        ),
        compiler_params=cparams,
        cost_estimate=cost,
    )(phi_p, phi_p)


def gaussian_process_potential_forward(x, jac, n_sys, atoms_per_sys,
                                       noise_signal):
    """Returns (mean, covariance) of the MultivariateNormal from forward()."""
    n_atoms, d = x.shape
    # K_EE source: per-system energy feature = sum of atomic descriptors.
    # TODO(synk): assumes every system has exactly atoms_per_sys atoms; the
    # PyTorch EnergyForceKernel also handles ragged system sizes.
    e_feat = x.reshape(n_sys, atoms_per_sys, d).sum(axis=1)           # (S, D)
    # K_FF / K_EF / K_FE source: force features = -dX_i/dr_{i,c},
    # atom-major then (x, y, z).
    f_feat = -jnp.transpose(jac, (0, 2, 1)).reshape(3 * n_atoms, d)   # (3N, D)
    phi = jnp.concatenate([e_feat, f_feat], axis=0)                   # (M, D)

    cov = gp_covariance(phi, noise_signal)
    mean = jnp.zeros(cov.shape[0], dtype=jnp.float32)
    # TODO(synk): torch.distributions.MultivariateNormal (log_prob, sampling)
    # has no Pallas equivalent; return its defining (mean, covariance) pair.
    return mean, cov


if __name__ == "__main__":
    # Deterministic synthetic "data": 4 systems x 20 atoms, descriptor dim 32.
    n_sys, atoms_per_sys, D = 4, 20, 32
    N = n_sys * atoms_per_sys
    key = jax.random.PRNGKey(0)
    kx, kj = jax.random.split(key)
    x = jax.random.normal(kx, (N, D), dtype=jnp.float32)              # descriptors
    J = 0.1 * jax.random.normal(kj, (N, D, 3), dtype=jnp.float32)     # dX/dr

    noise_signal = 0.01   # White(signal=0.01)
    # TODO(synk): general EnergyForceKernel supports arbitrary base kernels
    # (e.g. RBF with analytic position derivatives); this synthetic version
    # uses a dot-product descriptor kernel so all four blocks form one Gram
    # matrix computed on the MXU.

    mean, cov = gaussian_process_potential_forward(
        x, J, n_sys, atoms_per_sys, noise_signal)
    jax.block_until_ready(cov)

    # Reference check (plain JAX) of the forward-pass covariance.
    e_feat = x.reshape(n_sys, atoms_per_sys, D).sum(axis=1)
    f_feat = -jnp.transpose(J, (0, 2, 1)).reshape(3 * N, D)
    phi_ref = jnp.concatenate([e_feat, f_feat], axis=0)
    ref = phi_ref @ phi_ref.T + jnp.eye(phi_ref.shape[0],
                                        dtype=jnp.float32) * noise_signal ** 2
    M = n_sys + 3 * N
    assert cov.shape == (M, M)
    assert mean.shape == (M,)
    assert jnp.allclose(cov, ref, atol=1e-3, rtol=1e-4)

    print("KERNEL_OK")
</pallas_src>

<mosaic_0001>
module attributes {stable_mosaic.version = 11 : i64} {
  func.func @_gram_resident_kernel(%arg0: i32, %arg1: i32, %arg2: memref<256x128xf32, #tpu.memory_space<vmem>>, %arg3: memref<256x256xf32, #tpu.memory_space<vmem>>) attributes {dimension_semantics = [#tpu.dimension_semantics<parallel>, #tpu.dimension_semantics<parallel>], iteration_bounds = array<i64: 1, 1>, scalar_prefetch = 0 : i64, scratch_operands = 0 : i64, tpu.core_type = #tpu.core_type<tc>, window_params = [{pipeline_mode = #tpu.pipeline_mode<synchronous>, transform_indices = @transform_0, window_bounds = array<i64: 256, 128>}, {transform_indices = @transform_1, window_bounds = array<i64: 256, 256>}]} {
    %c256_i32 = arith.constant 256 : i32
    %0 = arith.muli %arg0, %c256_i32 : i32
    %1 = tpu.assume_multiple %0, 256 : i32
    %c256_i32_0 = arith.constant 256 : i32
    %2 = arith.muli %arg1, %c256_i32_0 : i32
    %3 = tpu.assume_multiple %2, 256 : i32
    %4 = arith.index_cast %1 : i32 to index
    %c0 = arith.constant 0 : index
    %5 = vector.load %arg2[%4, %c0] : memref<256x128xf32, #tpu.memory_space<vmem>>, vector<256x128xf32>
    %6 = arith.index_cast %3 : i32 to index
    %c0_1 = arith.constant 0 : index
    %7 = vector.load %arg2[%6, %c0_1] : memref<256x128xf32, #tpu.memory_space<vmem>>, vector<256x128xf32>
    %cst = arith.constant dense<0.000000e+00> : vector<256x256xf32>
    %8 = tpu.matmul %5, %7, %cst {dimension_numbers = #tpu.dot_dimension_numbers<[1], [1], [0], [0], [0, 0, 1, 0], [], []>} : vector<256x128xf32>, vector<256x128xf32>, vector<256x256xf32> -> vector<256x256xf32>
    %9 = arith.cmpi ne, %arg0, %arg1 : i32
    %10 = arith.extui %9 : i1 to i32
    %c0_i32 = arith.constant 0 : i32
    %11 = arith.cmpi ne, %10, %c0_i32 : i32
    scf.if %11 {
      %c0_3 = arith.constant 0 : index
      %c0_4 = arith.constant 0 : index
      %15 = vector.load %arg3[%c0_3, %c0_4] : memref<256x256xf32, #tpu.memory_space<vmem>>, vector<256x256xf32>
      tpu.vector_store %arg3[%c0_3, %c0_4], %8 {strides = array<i32>} : memref<256x256xf32, #tpu.memory_space<vmem>>, vector<256x256xf32>,
    } else {
    }
    %12 = arith.cmpi eq, %arg0, %arg1 : i32
    %13 = arith.extui %12 : i1 to i32
    %c0_i32_2 = arith.constant 0 : i32
    %14 = arith.cmpi ne, %13, %c0_i32_2 : i32
    scf.if %14 {
      %15 = tpu.iota {dimensions = array<i32: 0>} : vector<256x256xi32>
      %16 = tpu.iota {dimensions = array<i32: 1>} : vector<256x256xi32>
      %17 = arith.cmpi eq, %15, %16 : vector<256x256xi32>
      %cst_3 = arith.constant 9.99999974E-5 : f32
      %cst_4 = arith.constant 0.000000e+00 : f32
      %18 = vector.broadcast %cst_3 : f32 to vector<256x256xf32>
      %19 = vector.broadcast %cst_4 : f32 to vector<256x256xf32>
      %20 = arith.select %17, %18, %19 : vector<256x256xi1>, vector<256x256xf32>
      %21 = arith.addf %8, %20 : vector<256x256xf32>
      %c0_5 = arith.constant 0 : index
      %c0_6 = arith.constant 0 : index
      %22 = vector.load %arg3[%c0_5, %c0_6] : memref<256x256xf32, #tpu.memory_space<vmem>>, vector<256x256xf32>
      tpu.vector_store %arg3[%c0_5, %c0_6], %21 {strides = array<i32>} : memref<256x256xf32, #tpu.memory_space<vmem>>, vector<256x256xf32>,
    } else {
    }
    return
  }
  func.func @transform_0(%arg0: i32, %arg1: i32) -> (i32, i32) {
    %c0_i32 = arith.constant 0 : i32
    %c0_i32_0 = arith.constant 0 : i32
    %c0_i32_1 = arith.constant 0 : i32
    return %c0_i32, %c0_i32_0 : i32, i32
  }
  func.func @transform_1(%arg0: i32, %arg1: i32) -> (i32, i32) {
    %c0_i32 = arith.constant 0 : i32
    return %arg0, %arg1 : i32, i32
  }
}

</mosaic_0001>

<bundles_post_ra>
// kernel: tpu_custom_call.1
= control target key start
LH: loop header
LB: loop body
LE: loop exit
PB: predicated region body
PF: predicated region fallthrough
CT: control target
= control target key end

     0   :  { %6 = vsyncpa [#allocation3], 0  ;;  %s1222_s0 = inlined_call_operand.hbm [shape: f32[256,128], index: 0, kind: input, shape index: {}]   ;;  %s1223_s1 = inlined_call_operand.hbm [shape: f32[244,244], index: 1, kind: output, shape index: {}]  }
   0x1   :  { %7 = vsyncpa [#allocation4], 0  ;;  %s928_s6 = smov [#allocation2]   ;;  %s880_s10 = scalar_lea.hbm %s1222_s0, 4096 }
   0x2   :  { %s13_s7 = sshll.u32 %s928_s6, 4  ;;  %p881_p0 = scmp.ne.s32.totalorder %s1222_s0, %s880_s10  ;;  %s14_s7 = int_to_ptr.vmem [resolvable:$true] %s13_s7 }
   0x3   :  { %p884_p1 = scmp.lt.u32.totalorder %s880_s10, %s1222_s0 }
   0x5   :  { %p886_p2 = pnand %p884_p1, %p881_p0 }
   0x7   :  { %889 = shalt.err (!%p886_p2)
}
   0x8   :  { %s890_s15 = scalar_lea.vmem %s14_s7, 4096  ;;  %p895_p4 = scmp.lt.s32.totalorder %s14_s7, %s14_s7 }
   0x9   :  { %p891_p3 = scmp.ne.s32.totalorder %s14_s7, %s890_s15  ;;  %p896_p5 = scmp.lt.s32.totalorder %s890_s15, %s890_s15 }
   0xb   :  { %p897_p6 = por %p896_p5, %p895_p4 }
   0xd   :  { %p898_p7 = pnand %p897_p6, %p891_p3 }
   0xf   :  { %901 = shalt.err (!%p898_p7)
}
  0x10   :  { %s929_s16 = smov 128   ;;  %s930_s17 = smov 8  }
  0x11   :  { %19 = dma.hbm_to_vmem [thread:$0]  %s1222_s0, 4096, %s14_s7, [#allocation3], %s929_s16, %s929_s16, %s930_s17  }
  0x12   :  { %924 = dma.done.wait [#allocation3], 4096  }
  0x13   :  { %925 = vsyncadd [#allocation3], 4294963200  ;;  %v957_v0 = vld [vmem:[#allocation2 + $0x80] sm:$0xff]  ;;  %v959_v1 = vld [vmem:[#allocation2 + $0x88] sm:$0xff]  ;;  %v420_v48 = vlaneseq  ;;  %v931_v55 = vmov 0.0  }
  0x14   :  { %v961_v2 = vld [vmem:[#allocation2] sm:$0xff]  ;;  %v825_v3 = vpack.c.bf16 %v959_v1, %v957_v0  ;;  %v965_v4 = vld [vmem:[#allocation2 + $0x8] sm:$0xff]  ;;  %v967_v5 = vld [vmem:[#allocation2 + $0x90] sm:$0xff]  ;;  %793 = vmatprep.mubr.f32.mxu1 %v957_v0 }
  0x15   :  { %v969_v6 = vld [vmem:[#allocation2 + $0x98] sm:$0xff]  ;;  %761 = vmatprep.mubr.f32.mxu0 %v961_v2  ;;  %v827_v7 = vpack.c.bf16 %v965_v4, %v961_v2  ;;  %v977_v9 = vld [vmem:[#allocation2 + $0x10] sm:$0xff]  ;;  %v981_v11 = vld [vmem:[#allocation2 + $0xa0] sm:$0xff]  ;;  %v1107_v49 = vshrl.u32 %v420_v48, 7  ;;  %v1109_v50 = vand.u32 127, %v420_v48 }
  0x16   :  { %v829_v8 = vpack.c.bf16 %v969_v6, %v967_v5  ;;  %826 = vmatprep.subr.bf16.mxu0 %v825_v3  ;;  %857 = vmatprep.subr.bf16.mxu1 %v825_v3  ;;  %v979_v10 = vld [vmem:[#allocation2 + $0x18] sm:$0xff]  ;;  %v983_v12 = vld [vmem:[#allocation2 + $0xa8] sm:$0xff]  ;;  %v989_v15 = vld [vmem:[#allocation2 + $0x20] sm:$0xff] }
  0x17   :  { %828 = vmatpush3.bf16.xpose.msra.mxu0 %v827_v7  ;;  %865 = vmatpush3.bf16.xpose.msra.mxu1 %v827_v7  ;;  %v831_v13 = vpack.c.bf16 %v979_v10, %v977_v9  ;;  %v833_v14 = vpack.c.bf16 %v983_v12, %v981_v11  ;;  %v991_v16 = vld [vmem:[#allocation2 + $0x28] sm:$0xff]  ;;  %v993_v17 = vld [vmem:[#allocation2 + $0xb0] sm:$0xff]  ;;  %v995_v18 = vld [vmem:[#allocation2 + $0xb8] sm:$0xff]  ;;  %v437_v51 = vadd.s32 128, %v1107_v49  ;;  %v1113_v52 = vadd.s32 128, %v1109_v50 }
  0x18   :  { %830 = vmatprep.subr.bf16.mxu0 %v829_v8  ;;  %858 = vmatprep.subr.bf16.mxu1 %v829_v8  ;;  %v835_v19 = vpack.c.bf16 %v991_v16, %v989_v15  ;;  %v837_v20 = vpack.c.bf16 %v995_v18, %v993_v17  ;;  %v1001_v21 = vld [vmem:[#allocation2 + $0x30] sm:$0xff]  ;;  %v1003_v22 = vld [vmem:[#allocation2 + $0x38] sm:$0xff]  ;;  %v1005_v23 = vld [vmem:[#allocation2 + $0xc0] sm:$0xff]  ;;  %vm456_vm0 = vcmp.eq.s32.totalorder %v1107_v49, %v1109_v50  ;;  %v422_v53 = vadd.s32 8, %v1107_v49 }
  0x19   :  { %v1007_v24 = vld [vmem:[#allocation2 + $0xc8] sm:$0xff]  ;;  %v839_v25 = vpack.c.bf16 %v1003_v22, %v1001_v21  ;;  %v1013_v27 = vld [vmem:[#allocation2 + $0x40] sm:$0xff]  ;;  %v1017_v29 = vld [vmem:[#allocation2 + $0xd0] sm:$0xff]  ;;  %vm489_vm1 = vcmp.eq.s32.totalorder %v437_v51, %v1113_v52  ;;  %v438_v54 = vadd.s32 136, %v1107_v49  ;;  %v520_v56 = vsel %vm456_vm0, 0.0001, %v931_v55 }
  0x1a   :  { %v841_v26 = vpack.c.bf16 %v1007_v24, %v1005_v23  ;;  %v1015_v28 = vld [vmem:[#allocation2 + $0x48] sm:$0xff]  ;;  %v1019_v30 = vld [vmem:[#allocation2 + $0xd8] sm:$0xff]  ;;  %v1025_v33 = vld [vmem:[#allocation2 + $0x50] sm:$0xff]  ;;  %v553_v57 = vsel %vm489_vm1, 0.0001, %v931_v55  ;;  %vm458_vm2 = vcmp.eq.s32.totalorder %v422_v53, %v1109_v50  ;;  %v423_v58 = vadd.s32 16, %v1107_v49 }
  0x1b   :  { %v843_v31 = vpack.c.bf16 %v1015_v28, %v1013_v27  ;;  %v845_v32 = vpack.c.bf16 %v1019_v30, %v1017_v29  ;;  %v1027_v34 = vld [vmem:[#allocation2 + $0x58] sm:$0xff]  ;;  %v1029_v35 = vld [vmem:[#allocation2 + $0xe0] sm:$0xff]  ;;  %v1031_v36 = vld [vmem:[#allocation2 + $0xe8] sm:$0xff]  ;;  %vm491_vm3 = vcmp.eq.s32.totalorder %v438_v54, %v1113_v52  ;;  %v439_v61 = vadd.s32 144, %v1107_v49 }
  0x1c   :  { %v847_v37 = vpack.c.bf16 %v1027_v34, %v1025_v33  ;;  %v849_v38 = vpack.c.bf16 %v1031_v36, %v1029_v35  ;;  %v71_v39 = vld [vmem:[#allocation2 + $0x60] sm:$0xff]  ;;  %v1037_v40 = vld [vmem:[#allocation2 + $0x68] sm:$0xff]  ;;  %v1039_v41 = vld [vmem:[#allocation2 + $0xf0] sm:$0xff]  ;;  %v555_v3 = vsel %vm491_vm3, 0.0001, %v931_v55  ;;  %vm460_vm4 = vcmp.eq.s32.totalorder %v423_v58, %v1109_v50 }
  0x1d   :  { %v1041_v42 = vld [vmem:[#allocation2 + $0xf8] sm:$0xff]  ;;  %v851_v43 = vpack.c.bf16 %v1037_v40, %v71_v39  ;;  %v73_v45 = vld [vmem:[#allocation2 + $0x70] sm:$0xff]  ;;  %vm493_vm5 = vcmp.eq.s32.totalorder %v439_v61, %v1113_v52  ;;  %v440_v7 = vadd.s32 152, %v1107_v49  ;;  %v429_v58 = vadd.s32 64, %v1107_v49 }
  0x1e   :  { %v853_v44 = vpack.c.bf16 %v1041_v42, %v1039_v41  ;;  %v1046_v46 = vld [vmem:[#allocation2 + $0x78] sm:$0xff]  ;;  %v445_v61 = vadd.s32 192, %v1107_v49 }
  0x1f   :  { %832 = vmatpush3.bf16.xpose.msra.mxu0 %v831_v13  ;;  %866 = vmatpush3.bf16.xpose.msra.mxu1 %v831_v13  ;;  %v855_v47 = vpack.c.bf16 %v1046_v46, %v73_v45  ;;  %v557_v13 = vsel %vm493_vm5, 0.0001, %v931_v55  ;;  %vm495_vm7 = vcmp.eq.s32.totalorder %v440_v7, %v1113_v52  ;;  %vm472_vm0 = vcmp.eq.s32.totalorder %v429_v58, %v1109_v50 }
  0x20   :  { %834 = vmatprep.subr.bf16.mxu0 %v833_v14  ;;  %859 = vmatprep.subr.bf16.mxu1 %v833_v14  ;;  %v425_v14 = vadd.s32 32, %v1107_v49  ;;  %vm505_vm1 = vcmp.eq.s32.totalorder %v445_v61, %v1113_v52  ;;  %v446_v7 = vadd.s32 200, %v1107_v49  ;;  %v435_v58 = vadd.s32 112, %v1107_v49 }
  0x21   :  { %v451_v61 = vadd.s32 240, %v1107_v49 }
  0x22   :  { %vm464_vm8 = vcmp.eq.s32.totalorder %v425_v14, %v1109_v50  ;;  %v431_v14 = vadd.s32 80, %v1107_v49  ;;  %vm507_vm3 = vcmp.eq.s32.totalorder %v446_v7, %v1113_v52  ;;  %v452_v7 = vadd.s32 248, %v1107_v49 }
  0x27   :  { %836 = vmatpush3.bf16.xpose.msra.mxu0 %v835_v19  ;;  %867 = vmatpush3.bf16.xpose.msra.mxu1 %v835_v19 }
  0x28   :  { %838 = vmatprep.subr.bf16.mxu0 %v837_v20  ;;  %860 = vmatprep.subr.bf16.mxu1 %v837_v20 }
  0x2f   :  { %840 = vmatpush3.bf16.xpose.msra.mxu0 %v839_v25  ;;  %868 = vmatpush3.bf16.xpose.msra.mxu1 %v839_v25 }
  0x30   :  { %842 = vmatprep.subr.bf16.mxu0 %v841_v26  ;;  %861 = vmatprep.subr.bf16.mxu1 %v841_v26 }
  0x37   :  { %844 = vmatpush3.bf16.xpose.msra.mxu0 %v843_v31  ;;  %869 = vmatpush3.bf16.xpose.msra.mxu1 %v843_v31 }
  0x38   :  { %846 = vmatprep.subr.bf16.mxu0 %v845_v32  ;;  %862 = vmatprep.subr.bf16.mxu1 %v845_v32  ;;  %v528_v32 = vsel %vm464_vm8, 0.0001, %v931_v55 }
  0x3f   :  { %848 = vmatpush3.bf16.xpose.msra.mxu0 %v847_v37  ;;  %870 = vmatpush3.bf16.xpose.msra.mxu1 %v847_v37  ;;  %v443_v37 = vadd.s32 176, %v1107_v49 }
  0x40   :  { %850 = vmatprep.subr.bf16.mxu0 %v849_v38  ;;  %863 = vmatprep.subr.bf16.mxu1 %v849_v38 }
  0x41   :  { %vm501_vm13 = vcmp.eq.s32.totalorder %v443_v37, %v1113_v52  ;;  %v449_v37 = vadd.s32 224, %v1107_v49 }
  0x47   :  { %852 = vmatpush3.bf16.xpose.msra.mxu0 %v851_v43  ;;  %871 = vmatpush3.bf16.xpose.msra.mxu1 %v851_v43 }
  0x48   :  { %854 = vmatprep.subr.bf16.mxu0 %v853_v44  ;;  %864 = vmatprep.subr.bf16.mxu1 %v853_v44  ;;  %v428_v44 = vadd.s32 56, %v1107_v49 }
  0x4a   :  { %vm470_vm14 = vcmp.eq.s32.totalorder %v428_v44, %v1109_v50  ;;  %v434_v44 = vadd.s32 104, %v1107_v49 }
  0x4f   :  { %856 = vmatpush3.bf16.xpose.msra.mxu0 %v855_v47  ;;  %872 = vmatpush3.bf16.xpose.msra.mxu1 %v855_v47  ;;  %v444_v47 = vadd.s32 184, %v1107_v49 }
  0x51   :  { %vm503_vm15 = vcmp.eq.s32.totalorder %v444_v47, %v1113_v52  ;;  %v450_v47 = vadd.s32 232, %v1107_v49 }
  0x56   :  { %762 = vmatmul.mubr.f32.vlgmr.msra.gmra.mrb[0].mxu0 %v961_v2  ;;  %794 = vmatmul.mubr.f32.vlgmr.msra.gmra.mrb[0].mxu1 %v957_v0  ;;  %v522_v2 = vsel %vm458_vm2, 0.0001, %v931_v55 }
  0x57   :  { %763 = vmatprep.mubr.f32.mxu0 %v965_v4  ;;  %795 = vmatprep.mubr.f32.mxu1 %v959_v1 }
  0x5a   :  { %764 = vmatmul.mubr.f32.gmra.mrb[2].mxu0 %v965_v4  ;;  %796 = vmatmul.mubr.f32.gmra.mrb[2].mxu1 %v959_v1  ;;  %v424_v4 = vadd.s32 24, %v1107_v49 }
  0x5b   :  { %765 = vmatprep.mubr.f32.mxu0 %v977_v9  ;;  %797 = vmatprep.mubr.f32.mxu1 %v967_v5 }
  0x5c   :  { %vm462_vm6 = vcmp.eq.s32.totalorder %v424_v4, %v1109_v50  ;;  %v430_v4 = vadd.s32 72, %v1107_v49 }
  0x5e   :  { %766 = vmatmul.mubr.f32.gmra.mrb[4].mxu0 %v977_v9  ;;  %798 = vmatmul.mubr.f32.gmra.mrb[4].mxu1 %v967_v5  ;;  %vm474_vm2 = vcmp.eq.s32.totalorder %v430_v4, %v1109_v50  ;;  %v436_v4 = vadd.s32 120, %v1107_v49 }
  0x5f   :  { %767 = vmatprep.mubr.f32.mxu0 %v979_v10  ;;  %799 = vmatprep.mubr.f32.mxu1 %v969_v6 }
  0x62   :  { %768 = vmatmul.mubr.f32.gmra.mrb[6].mxu0 %v979_v10  ;;  %800 = vmatmul.mubr.f32.gmra.mrb[6].mxu1 %v969_v6 }
  0x63   :  { %769 = vmatprep.mubr.f32.mxu0 %v989_v15  ;;  %801 = vmatprep.mubr.f32.mxu1 %v981_v11 }
  0x66   :  { %770 = vmatmul.mubr.f32.gmra.mrb[8].mxu0 %v989_v15  ;;  %802 = vmatmul.mubr.f32.gmra.mrb[8].mxu1 %v981_v11 }
  0x67   :  { %771 = vmatprep.mubr.f32.mxu0 %v991_v16  ;;  %803 = vmatprep.mubr.f32.mxu1 %v983_v12 }
  0x6a   :  { %772 = vmatmul.mubr.f32.gmra.mrb[10].mxu0 %v991_v16  ;;  %804 = vmatmul.mubr.f32.gmra.mrb[10].mxu1 %v983_v12  ;;  %v524_v12 = vsel %vm460_vm4, 0.0001, %v931_v55  ;;  %vm476_vm4 = vcmp.eq.s32.totalorder %v431_v14, %v1109_v50 }
  0x6b   :  { %773 = vmatprep.mubr.f32.mxu0 %v1001_v21  ;;  %805 = vmatprep.mubr.f32.mxu1 %v993_v17 }
  0x6e   :  { %774 = vmatmul.mubr.f32.gmra.mrb[12].mxu0 %v1001_v21  ;;  %806 = vmatmul.mubr.f32.gmra.mrb[12].mxu1 %v993_v17  ;;  %v441_v17 = vadd.s32 160, %v1107_v49 }
  0x6f   :  { %775 = vmatprep.mubr.f32.mxu0 %v1003_v22  ;;  %807 = vmatprep.mubr.f32.mxu1 %v995_v18 }
  0x70   :  { %vm497_vm9 = vcmp.eq.s32.totalorder %v441_v17, %v1113_v52  ;;  %v447_v17 = vadd.s32 208, %v1107_v49 }
  0x72   :  { %776 = vmatmul.mubr.f32.gmra.mrb[14].mxu0 %v1003_v22  ;;  %808 = vmatmul.mubr.f32.gmra.mrb[14].mxu1 %v995_v18  ;;  %v526_v22 = vsel %vm462_vm6, 0.0001, %v931_v55  ;;  %vm509_vm5 = vcmp.eq.s32.totalorder %v447_v17, %v1113_v52 }
  0x73   :  { %777 = vmatprep.mubr.f32.mxu0 %v1013_v27  ;;  %809 = vmatprep.mubr.f32.mxu1 %v1005_v23 }
  0x76   :  { %778 = vmatmul.mubr.f32.gmra.mrb[16].mxu0 %v1013_v27  ;;  %810 = vmatmul.mubr.f32.gmra.mrb[16].mxu1 %v1005_v23  ;;  %v559_v23 = vsel %vm495_vm7, 0.0001, %v931_v55  ;;  %v442_v27 = vadd.s32 168, %v1107_v49 }
  0x77   :  { %779 = vmatprep.mubr.f32.mxu0 %v1015_v28  ;;  %811 = vmatprep.mubr.f32.mxu1 %v1007_v24 }
  0x78   :  { %vm499_vm11 = vcmp.eq.s32.totalorder %v442_v27, %v1113_v52  ;;  %v448_v27 = vadd.s32 216, %v1107_v49 }
  0x79   :  { %v563_v43 = vsel %vm499_vm11, 0.0001, %v931_v55  ;;  %vm515_vm11 = vcmp.eq.s32.totalorder %v450_v47, %v1113_v52 }
  0x7a   :  { %780 = vmatmul.mubr.f32.gmra.mrb[18].mxu0 %v1015_v28  ;;  %812 = vmatmul.mubr.f32.gmra.mrb[18].mxu1 %v1007_v24  ;;  %v426_v24 = vadd.s32 40, %v1107_v49  ;;  %vm511_vm7 = vcmp.eq.s32.totalorder %v448_v27, %v1113_v52 }
  0x7b   :  { %781 = vmatprep.mubr.f32.mxu0 %v1025_v33  ;;  %813 = vmatprep.mubr.f32.mxu1 %v1017_v29 }
  0x7c   :  { %vm466_vm10 = vcmp.eq.s32.totalorder %v426_v24, %v1109_v50  ;;  %v432_v24 = vadd.s32 88, %v1107_v49 }
  0x7e   :  { %782 = vmatmul.mubr.f32.gmra.mrb[20].mxu0 %v1025_v33  ;;  %814 = vmatmul.mubr.f32.gmra.mrb[20].mxu1 %v1017_v29  ;;  %v561_v33 = vsel %vm497_vm9, 0.0001, %v931_v55  ;;  %vm478_vm6 = vcmp.eq.s32.totalorder %v432_v24, %v1109_v50  ;;  %vm513_vm9 = vcmp.eq.s32.totalorder %v449_v37, %v1113_v52 }
  0x7f   :  { %783 = vmatprep.mubr.f32.mxu0 %v1027_v34  ;;  %815 = vmatprep.mubr.f32.mxu1 %v1019_v30 }
  0x82   :  { %784 = vmatmul.mubr.f32.gmra.mrb[22].mxu0 %v1027_v34  ;;  %816 = vmatmul.mubr.f32.gmra.mrb[22].mxu1 %v1019_v30  ;;  %v427_v34 = vadd.s32 48, %v1107_v49 }
  0x83   :  { %785 = vmatprep.mubr.f32.mxu0 %v71_v39  ;;  %817 = vmatprep.mubr.f32.mxu1 %v1029_v35 }
  0x84   :  { %vm468_vm12 = vcmp.eq.s32.totalorder %v427_v34, %v1109_v50  ;;  %v433_v34 = vadd.s32 96, %v1107_v49 }
  0x86   :  { %786 = vmatmul.mubr.f32.gmra.mrb[24].mxu0 %v71_v39  ;;  %818 = vmatmul.mubr.f32.gmra.mrb[24].mxu1 %v1029_v35  ;;  %vm480_vm8 = vcmp.eq.s32.totalorder %v433_v34, %v1109_v50 }
  0x87   :  { %787 = vmatprep.mubr.f32.mxu0 %v1037_v40  ;;  %819 = vmatprep.mubr.f32.mxu1 %v1031_v36 }
  0x8a   :  { %788 = vmatmul.mubr.f32.gmra.mrb[26].mxu0 %v1037_v40  ;;  %820 = vmatmul.mubr.f32.gmra.mrb[26].mxu1 %v1031_v36 }
  0x8b   :  { %789 = vmatprep.mubr.f32.mxu0 %v73_v45  ;;  %821 = vmatprep.mubr.f32.mxu1 %v1039_v41 }
  0x8e   :  { %790 = vmatmul.mubr.f32.gmra.mrb[28].mxu0 %v73_v45  ;;  %822 = vmatmul.mubr.f32.gmra.mrb[28].mxu1 %v1039_v41 }
  0x8f   :  { %791 = vmatprep.mubr.f32.mxu0 %v1046_v46  ;;  %823 = vmatprep.mubr.f32.mxu1 %v1041_v42 }
  0x92   :  { %792 = vmatmul.mubr.f32.gmra.mrb[30].mxu0 %v1046_v46  ;;  %824 = vmatmul.mubr.f32.gmra.mrb[30].mxu1 %v1041_v42  ;;  %v530_v42 = vsel %vm466_vm10, 0.0001, %v931_v55  ;;  %vm482_vm10 = vcmp.eq.s32.totalorder %v434_v44, %v1109_v50 }
 0x129   :  { %v157_v59 = vpop.f32.mrb[0].mxu0  ;;  %v253_v60 = vpop.f32.mrb[0].mxu1 }
 0x12a   :  { %v584_v62 = vadd.f32 %v520_v56, %v157_v59  ;;  %680 = vst [vmem:[#allocation5 + $0x100] sm:$0xff] %v253_v60  ;;  %v159_v63 = vpop.f32.mrb[1].mxu0  ;;  %v255_v0 = vpop.f32.mrb[1].mxu1  ;;  %v532_v56 = vsel %vm468_vm12, 0.0001, %v931_v55  ;;  %vm484_vm12 = vcmp.eq.s32.totalorder %v435_v58, %v1109_v50 }
 0x12b   :  { %649 = vst [vmem:[#allocation5 + $0x8] sm:$0xff] %v159_v63  ;;  %v617_v1 = vadd.f32 %v553_v57, %v255_v0  ;;  %v565_v57 = vsel %vm501_vm13, 0.0001, %v931_v55  ;;  %vm517_vm13 = vcmp.eq.s32.totalorder %v451_v61, %v1113_v52 }
 0x12c   :  { %648 = vst [vmem:[#allocation5] sm:$0xff] %v584_v62 }
 0x12d   :  { %681 = vst [vmem:[#allocation5 + $0x108] sm:$0xff] %v617_v1  ;;  %v163_v5 = vpop.f32.mrb[2].mxu0  ;;  %v259_v6 = vpop.f32.mrb[2].mxu1 }
 0x12e   :  { %v586_v8 = vadd.f32 %v522_v2, %v163_v5  ;;  %682 = vst [vmem:[#allocation5 + $0x110] sm:$0xff] %v259_v6  ;;  %v165_v9 = vpop.f32.mrb[3].mxu0  ;;  %v261_v10 = vpop.f32.mrb[3].mxu1  ;;  %v534_v2 = vsel %vm470_vm14, 0.0001, %v931_v55  ;;  %vm486_vm14 = vcmp.eq.s32.totalorder %v436_v4, %v1109_v50 }
 0x12f   :  { %651 = vst [vmem:[#allocation5 + $0x18] sm:$0xff] %v165_v9  ;;  %v619_v11 = vadd.f32 %v555_v3, %v261_v10  ;;  %v567_v3 = vsel %vm503_vm15, 0.0001, %v931_v55  ;;  %vm519_vm15 = vcmp.eq.s32.totalorder %v452_v7, %v1113_v52 }
 0x130   :  { %650 = vst [vmem:[#allocation5 + $0x10] sm:$0xff] %v586_v8 }
 0x131   :  { %683 = vst [vmem:[#allocation5 + $0x118] sm:$0xff] %v619_v11  ;;  %v169_v15 = vpop.f32.mrb[4].mxu0  ;;  %v265_v16 = vpop.f32.mrb[4].mxu1 }
 0x132   :  { %v588_v18 = vadd.f32 %v524_v12, %v169_v15  ;;  %684 = vst [vmem:[#allocation5 + $0x120] sm:$0xff] %v265_v16  ;;  %v171_v19 = vpop.f32.mrb[5].mxu0  ;;  %v267_v20 = vpop.f32.mrb[5].mxu1  ;;  %v536_v12 = vsel %vm472_vm0, 0.0001, %v931_v55 }
 0x133   :  { %653 = vst [vmem:[#allocation5 + $0x28] sm:$0xff] %v171_v19  ;;  %v621_v21 = vadd.f32 %v557_v13, %v267_v20  ;;  %v569_v13 = vsel %vm505_vm1, 0.0001, %v931_v55 }
 0x134   :  { %652 = vst [vmem:[#allocation5 + $0x20] sm:$0xff] %v588_v18 }
 0x135   :  { %685 = vst [vmem:[#allocation5 + $0x128] sm:$0xff] %v621_v21  ;;  %v175_v25 = vpop.f32.mrb[6].mxu0  ;;  %v271_v26 = vpop.f32.mrb[6].mxu1 }
 0x136   :  { %v590_v28 = vadd.f32 %v526_v22, %v175_v25  ;;  %686 = vst [vmem:[#allocation5 + $0x130] sm:$0xff] %v271_v26  ;;  %v177_v29 = vpop.f32.mrb[7].mxu0  ;;  %v273_v30 = vpop.f32.mrb[7].mxu1  ;;  %v538_v22 = vsel %vm474_vm2, 0.0001, %v931_v55 }
 0x137   :  { %655 = vst [vmem:[#allocation5 + $0x38] sm:$0xff] %v177_v29  ;;  %v623_v31 = vadd.f32 %v559_v23, %v273_v30  ;;  %v571_v23 = vsel %vm507_vm3, 0.0001, %v931_v55 }
 0x138   :  { %654 = vst [vmem:[#allocation5 + $0x30] sm:$0xff] %v590_v28 }
 0x139   :  { %687 = vst [vmem:[#allocation5 + $0x138] sm:$0xff] %v623_v31  ;;  %v181_v35 = vpop.f32.mrb[8].mxu0  ;;  %v277_v36 = vpop.f32.mrb[8].mxu1 }
 0x13a   :  { %v592_v38 = vadd.f32 %v528_v32, %v181_v35  ;;  %688 = vst [vmem:[#allocation5 + $0x140] sm:$0xff] %v277_v36  ;;  %v183_v39 = vpop.f32.mrb[9].mxu0  ;;  %v279_v40 = vpop.f32.mrb[9].mxu1  ;;  %v540_v32 = vsel %vm476_vm4, 0.0001, %v931_v55 }
 0x13b   :  { %657 = vst [vmem:[#allocation5 + $0x48] sm:$0xff] %v183_v39  ;;  %v625_v41 = vadd.f32 %v561_v33, %v279_v40  ;;  %v573_v33 = vsel %vm509_vm5, 0.0001, %v931_v55 }
 0x13c   :  { %656 = vst [vmem:[#allocation5 + $0x40] sm:$0xff] %v592_v38 }
 0x13d   :  { %689 = vst [vmem:[#allocation5 + $0x148] sm:$0xff] %v625_v41  ;;  %v187_v45 = vpop.f32.mrb[10].mxu0  ;;  %v283_v46 = vpop.f32.mrb[10].mxu1 }
 0x13e   :  { %v594_v48 = vadd.f32 %v530_v42, %v187_v45  ;;  %690 = vst [vmem:[#allocation5 + $0x150] sm:$0xff] %v283_v46  ;;  %v189_v51 = vpop.f32.mrb[11].mxu0  ;;  %v285_v53 = vpop.f32.mrb[11].mxu1  ;;  %v542_v42 = vsel %vm478_vm6, 0.0001, %v931_v55 }
 0x13f   :  { %659 = vst [vmem:[#allocation5 + $0x58] sm:$0xff] %v189_v51  ;;  %v627_v54 = vadd.f32 %v563_v43, %v285_v53  ;;  %v575_v43 = vsel %vm511_vm7, 0.0001, %v931_v55 }
 0x140   :  { %658 = vst [vmem:[#allocation5 + $0x50] sm:$0xff] %v594_v48 }
 0x141   :  { %691 = vst [vmem:[#allocation5 + $0x158] sm:$0xff] %v627_v54  ;;  %v193_v59 = vpop.f32.mrb[12].mxu0  ;;  %v289_v60 = vpop.f32.mrb[12].mxu1 }
 0x142   :  { %v596_v62 = vadd.f32 %v532_v56, %v193_v59  ;;  %692 = vst [vmem:[#allocation5 + $0x160] sm:$0xff] %v289_v60  ;;  %v195_v63 = vpop.f32.mrb[13].mxu0  ;;  %v291_v0 = vpop.f32.mrb[13].mxu1  ;;  %v544_v56 = vsel %vm480_vm8, 0.0001, %v931_v55 }
 0x143   :  { %661 = vst [vmem:[#allocation5 + $0x68] sm:$0xff] %v195_v63  ;;  %v629_v1 = vadd.f32 %v565_v57, %v291_v0  ;;  %v577_v57 = vsel %vm513_vm9, 0.0001, %v931_v55 }
 0x144   :  { %660 = vst [vmem:[#allocation5 + $0x60] sm:$0xff] %v596_v62 }
 0x145   :  { %693 = vst [vmem:[#allocation5 + $0x168] sm:$0xff] %v629_v1  ;;  %v199_v5 = vpop.f32.mrb[14].mxu0  ;;  %v295_v6 = vpop.f32.mrb[14].mxu1 }
 0x146   :  { %v598_v8 = vadd.f32 %v534_v2, %v199_v5  ;;  %694 = vst [vmem:[#allocation5 + $0x170] sm:$0xff] %v295_v6  ;;  %v201_v9 = vpop.f32.mrb[15].mxu0  ;;  %v297_v10 = vpop.f32.mrb[15].mxu1  ;;  %v546_v2 = vsel %vm482_vm10, 0.0001, %v931_v55 }
 0x147   :  { %663 = vst [vmem:[#allocation5 + $0x78] sm:$0xff] %v201_v9  ;;  %v631_v11 = vadd.f32 %v567_v3, %v297_v10  ;;  %v579_v3 = vsel %vm515_vm11, 0.0001, %v931_v55 }
 0x148   :  { %662 = vst [vmem:[#allocation5 + $0x70] sm:$0xff] %v598_v8 }
 0x149   :  { %695 = vst [vmem:[#allocation5 + $0x178] sm:$0xff] %v631_v11  ;;  %v205_v15 = vpop.f32.mrb[16].mxu0  ;;  %v301_v16 = vpop.f32.mrb[16].mxu1 }
 0x14a   :  { %v600_v18 = vadd.f32 %v536_v12, %v205_v15  ;;  %696 = vst [vmem:[#allocation5 + $0x180] sm:$0xff] %v301_v16  ;;  %v207_v19 = vpop.f32.mrb[17].mxu0  ;;  %v303_v20 = vpop.f32.mrb[17].mxu1  ;;  %v548_v12 = vsel %vm484_vm12, 0.0001, %v931_v55 }
 0x14b   :  { %665 = vst [vmem:[#allocation5 + $0x88] sm:$0xff] %v207_v19  ;;  %v633_v21 = vadd.f32 %v569_v13, %v303_v20  ;;  %v581_v13 = vsel %vm517_vm13, 0.0001, %v931_v55  ;;  %v550_v19 = vsel %vm486_vm14, 0.0001, %v931_v55 }
 0x14c   :  { %664 = vst [vmem:[#allocation5 + $0x80] sm:$0xff] %v600_v18  ;;  %v583_v20 = vsel %vm519_vm15, 0.0001, %v931_v55 }
 0x14d   :  { %697 = vst [vmem:[#allocation5 + $0x188] sm:$0xff] %v633_v21  ;;  %v211_v25 = vpop.f32.mrb[18].mxu0  ;;  %v307_v26 = vpop.f32.mrb[18].mxu1 }
 0x14e   :  { %v602_v28 = vadd.f32 %v538_v22, %v211_v25  ;;  %698 = vst [vmem:[#allocation5 + $0x190] sm:$0xff] %v307_v26  ;;  %v213_v29 = vpop.f32.mrb[19].mxu0  ;;  %v309_v30 = vpop.f32.mrb[19].mxu1 }
 0x14f   :  { %667 = vst [vmem:[#allocation5 + $0x98] sm:$0xff] %v213_v29  ;;  %v635_v31 = vadd.f32 %v571_v23, %v309_v30 }
 0x150   :  { %666 = vst [vmem:[#allocation5 + $0x90] sm:$0xff] %v602_v28 }
 0x151   :  { %699 = vst [vmem:[#allocation5 + $0x198] sm:$0xff] %v635_v31  ;;  %v217_v35 = vpop.f32.mrb[20].mxu0  ;;  %v313_v36 = vpop.f32.mrb[20].mxu1 }
 0x152   :  { %v604_v38 = vadd.f32 %v540_v32, %v217_v35  ;;  %700 = vst [vmem:[#allocation5 + $0x1a0] sm:$0xff] %v313_v36  ;;  %v219_v39 = vpop.f32.mrb[21].mxu0  ;;  %v315_v40 = vpop.f32.mrb[21].mxu1 }
 0x153   :  { %669 = vst [vmem:[#allocation5 + $0xa8] sm:$0xff] %v219_v39  ;;  %v637_v41 = vadd.f32 %v573_v33, %v315_v40 }
 0x154   :  { %668 = vst [vmem:[#allocation5 + $0xa0] sm:$0xff] %v604_v38 }
 0x155   :  { %701 = vst [vmem:[#allocation5 + $0x1a8] sm:$0xff] %v637_v41  ;;  %v223_v45 = vpop.f32.mrb[22].mxu0  ;;  %v319_v46 = vpop.f32.mrb[22].mxu1 }
 0x156   :  { %v606_v48 = vadd.f32 %v542_v42, %v223_v45  ;;  %702 = vst [vmem:[#allocation5 + $0x1b0] sm:$0xff] %v319_v46  ;;  %v225_v51 = vpop.f32.mrb[23].mxu0  ;;  %v321_v53 = vpop.f32.mrb[23].mxu1 }
 0x157   :  { %671 = vst [vmem:[#allocation5 + $0xb8] sm:$0xff] %v225_v51  ;;  %v639_v54 = vadd.f32 %v575_v43, %v321_v53 }
 0x158   :  { %670 = vst [vmem:[#allocation5 + $0xb0] sm:$0xff] %v606_v48 }
 0x159   :  { %703 = vst [vmem:[#allocation5 + $0x1b8] sm:$0xff] %v639_v54  ;;  %v229_v59 = vpop.f32.mrb[24].mxu0  ;;  %v325_v60 = vpop.f32.mrb[24].mxu1 }
 0x15a   :  { %v608_v62 = vadd.f32 %v544_v56, %v229_v59  ;;  %704 = vst [vmem:[#allocation5 + $0x1c0] sm:$0xff] %v325_v60  ;;  %v231_v63 = vpop.f32.mrb[25].mxu0  ;;  %v327_v0 = vpop.f32.mrb[25].mxu1 }
 0x15b   :  { %673 = vst [vmem:[#allocation5 + $0xc8] sm:$0xff] %v231_v63  ;;  %v641_v1 = vadd.f32 %v577_v57, %v327_v0 }
 0x15c   :  { %672 = vst [vmem:[#allocation5 + $0xc0] sm:$0xff] %v608_v62 }
 0x15d   :  { %705 = vst [vmem:[#allocation5 + $0x1c8] sm:$0xff] %v641_v1  ;;  %v235_v5 = vpop.f32.mrb[26].mxu0  ;;  %v331_v6 = vpop.f32.mrb[26].mxu1 }
 0x15e   :  { %v610_v8 = vadd.f32 %v546_v2, %v235_v5  ;;  %706 = vst [vmem:[#allocation5 + $0x1d0] sm:$0xff] %v331_v6  ;;  %v237_v9 = vpop.f32.mrb[27].mxu0  ;;  %v333_v10 = vpop.f32.mrb[27].mxu1 }
 0x15f   :  { %675 = vst [vmem:[#allocation5 + $0xd8] sm:$0xff] %v237_v9  ;;  %v643_v11 = vadd.f32 %v579_v3, %v333_v10 }
 0x160   :  { %674 = vst [vmem:[#allocation5 + $0xd0] sm:$0xff] %v610_v8 }
 0x161   :  { %707 = vst [vmem:[#allocation5 + $0x1d8] sm:$0xff] %v643_v11  ;;  %v241_v14 = vpop.f32.mrb[28].mxu0  ;;  %v337_v15 = vpop.f32.mrb[28].mxu1 }
 0x162   :  { %v612_v16 = vadd.f32 %v548_v12, %v241_v14  ;;  %708 = vst [vmem:[#allocation5 + $0x1e0] sm:$0xff] %v337_v15  ;;  %v243_v49 = vpop.f32.mrb[29].mxu0  ;;  %v339_v17 = vpop.f32.mrb[29].mxu1 }
 0x163   :  { %677 = vst [vmem:[#allocation5 + $0xe8] sm:$0xff] %v243_v49  ;;  %v645_v18 = vadd.f32 %v581_v13, %v339_v17 }
 0x164   :  { %676 = vst [vmem:[#allocation5 + $0xe0] sm:$0xff] %v612_v16 }
 0x165   :  { %709 = vst [vmem:[#allocation5 + $0x1e8] sm:$0xff] %v645_v18  ;;  %v247_v21 = vpop.f32.mrb[30].mxu0  ;;  %v343_v22 = vpop.f32.mrb[30].mxu1 }
 0x166   :  { %v614_v50 = vadd.f32 %v550_v19, %v247_v21  ;;  %710 = vst [vmem:[#allocation5 + $0x1f0] sm:$0xff] %v343_v22  ;;  %v249_v23 = vpop.f32.mrb[31].mxu0  ;;  %v345_v24 = vpop.f32.mrb[31].mxu1 }
 0x167   :  { %679 = vst [vmem:[#allocation5 + $0xf8] sm:$0xff] %v249_v23  ;;  %v647_v52 = vadd.f32 %v583_v20, %v345_v24 }
 0x168   :  { %678 = vst [vmem:[#allocation5 + $0xf0] sm:$0xff] %v614_v50 }
 0x169   :  { %711 = vst [vmem:[#allocation5 + $0x1f8] sm:$0xff] %v647_v52 }
 0x16a   :  { %716 = vsyncadd [#allocation4], 256  ;;  %s932_s0 = smov [#allocation5]  }
 0x16b   :  { %s717_s20 = sshll.u32 %s932_s0, 4  ;;  %s718_s20 = int_to_ptr.vmem [resolvable:$true] %s717_s20 }
 0x16c   :  { %s902_s21 = scalar_lea.vmem %s718_s20, 7936  ;;  %s906_s22 = scalar_lea.vmem %s718_s20, 8192 }
 0x16d   :  { %p903_p8 = scmp.ne.s32.totalorder %s718_s20, %s902_s21  ;;  %p907_p9 = scmp.lt.s32.totalorder %s718_s20, %s718_s20 }
 0x16e   :  { %p908_p10 = scmp.lt.s32.totalorder %s906_s22, %s902_s21 }
 0x170   :  { %p909_p11 = por %p908_p10, %p907_p9 }
 0x172   :  { %p910_p12 = pnand %p909_p11, %p903_p8 }
 0x174   :  { %913 = shalt.err (!%p910_p12)
}
 0x175   :  { %s914_s25 = scalar_lea.hbm %s1223_s1, 7936 }
 0x176   :  { %p915_p13 = scmp.ne.s32.totalorder %s1223_s1, %s914_s25  ;;  %p918_p0 = scmp.lt.u32.totalorder %s914_s25, %s1223_s1 }
 0x178   :  { %p920_p1 = pnand %p918_p0, %p915_p13 }
 0x17a   :  { %923 = shalt.err (!%p920_p1)
}
 0x17b   :  { %s933_s30 = smov 256   ;;  %s934_s2 = smov 16  }
 0x17c   :  { %723 = dma.vmem_to_hbm [thread:$0]  %s718_s20, 7936, %s1223_s1, [#allocation4], %s933_s30, %s933_s30, %s934_s2  }
 0x17d   :  { %926 = dma.done.wait [#allocation4], 8192  }
 0x17e   :  { %927 = vsyncadd [#allocation4], 4294959104 }
 0x17f   :  { %727 = vsyncpa [#allocation3], 1 }
 0x180   :  { %728 = vsyncpa [#allocation4], 1 }

</bundles_post_ra>
